<compile_context>
chip_gen: v7x
topology: tpu7x:2x2x1
jax: 0.10.0
libtpu: 0.0.40
codegen_flags: <defaults>
</compile_context>

<pallas_src>
import numpy as np
import jax
import jax.numpy as jnp
from jax.experimental import pallas as pl
from jax.experimental.pallas import tpu as pltpu


def _out_size(size, k, s, p):
    return (size + 2 * p - k) // s + 1


def _pack_rows(segments, dtype, row_align):
    """Stack 2-D segments along rows into one lane-padded buffer; return buffer + row offsets."""
    lanes = max(int(s.shape[1]) for s in segments)
    offs, total = [], 0
    for seg in segments:
        offs.append(total)
        total += -(-int(seg.shape[0]) // row_align) * row_align
    buf = np.zeros((total, lanes), np.float32)
    for off, seg in zip(offs, segments):
        buf[off:off + seg.shape[0], :seg.shape[1]] = np.asarray(seg, np.float32)
    return jnp.asarray(buf, dtype=dtype), offs


# ----------------------------------------------------------------------------
# Constant preparation (host / trace time)
# ----------------------------------------------------------------------------
def prepare_fused_consts(params, batch, height, width, eps=1e-5):
    convs = params["conv"]
    cin0 = convs[0]["cin"]
    layers, wsegs, fsegs, pad_shapes = [], [], [], []
    h, w = height, width
    for li, blk in enumerate(convs):
        k, s, p = blk["k"], blk["s"], blk["p"]
        cin, cout = blk["cin"], blk["cout"]
        oh, ow = _out_size(h, k, s, p), _out_size(w, k, s, p)
        hp = h + 2 * p

        gamma = np.asarray(blk["gamma"], np.float32)
        beta = np.asarray(blk["beta"], np.float32)
        mean = np.asarray(blk["mean"], np.float32)
        var = np.asarray(blk["var"], np.float32)
        scale = gamma / np.sqrt(var + eps)
        # relu(scale*x) == scale*relu(x) needs scale > 0 (true for the fresh stats).
        assert np.all(scale > 0), "BN-through-ReLU fold requires positive scale"
        shift = beta - mean * scale
        wnp = np.asarray(blk["w_oihw"], np.float32)
        bias = np.asarray(blk["bias"], np.float32)

        # Width placement (W padding folded into the weight slab as zero rows):
        #   P[w_in, q, j] = 1  iff  w_in == s*q + j - p.
        P = np.zeros((w, ow, k), np.float32)
        for q in range(ow):
            for j in range(k):
                w_in = s * q + j - p
                if 0 <= w_in < w:
                    P[w_in, q, j] = 1.0

        if li == 0:
            # Layer-1 input is raw NCHW: rows (n, c, h), lanes = w.
            # Gathered-operand lane order: (c, i, w_in).
            wstack = np.einsum("wqj,ocij,o->ciwqo", P, wnp, scale).reshape(cin * k * w, ow * cout)
            pad_shapes.append((batch * cin * hp, w))
        else:
            # Activation lanes are (w_in, c); gathered-operand lane order: (i, w_in, c).
            wstack = np.einsum("wqj,ocij,o->iwcqo", P, wnp, scale).reshape(k * w * cin, ow * cout)
            pad_shapes.append((batch * hp, w * cin))

        # Pre-broadcast fused conv-bias / BN-shift rows to full sublane extent.
        bias_full = np.broadcast_to(np.tile(bias * scale, ow), (batch * oh, ow * cout))
        shift_full = np.broadcast_to(np.tile(shift, ow), (batch * oh, ow * cout))

        layers.append(dict(k=k, s=s, p=p, hp=hp, oh=oh, ow=ow, cin=cin, cout=cout, w=w,
                           w_rows=int(wstack.shape[0])))
        wsegs.append(wstack)
        fsegs.append(np.array(bias_full))
        fsegs.append(np.array(shift_full))
        h, w = oh, ow

    oh_f, ow_f = h, w
    lin_w = np.asarray(params["lin_w"], np.float32)
    lin_b = np.asarray(params["lin_b"], np.float32)
    n_classes = int(lin_w.shape[0])
    # AdaptiveAvgPool(1): mean over W folded into the linear weights; mean over H
    # (only needed if the final height > 1) is a static row reduction in-kernel.
    wpl = np.tile(lin_w.T / ow_f, (ow_f, 1))                      # (ow_f*cout_last, n_classes)
    blin = np.broadcast_to(lin_b, (batch, n_classes))
    wsegs.append(wpl)
    fsegs.append(np.array(blin))

    wbuf, woffs = _pack_rows(wsegs, jnp.bfloat16, 16)             # all matmul constants (bf16)
    fbuf, foffs = _pack_rows(fsegs, jnp.float32, 8)               # bias/shift/linear-bias (f32)
    for li, L in enumerate(layers):
        L["w_off"] = woffs[li]
        L["b_off"] = foffs[2 * li]
        L["sh_off"] = foffs[2 * li + 1]

    cfg = dict(batch=batch, cin0=cin0, h0=height, w0=width, layers=layers,
               oh_f=oh_f, ow_f=ow_f, n_classes=n_classes,
               wpl_off=woffs[-1], wpl_rows=int(wsegs[-1].shape[0]), blin_off=foffs[-1],
               pad_shapes=pad_shapes)
    return cfg, wbuf, fbuf


# ----------------------------------------------------------------------------
# Fused forward kernel factory
# ----------------------------------------------------------------------------
def _make_kernel(cfg):
    N = cfg["batch"]
    cin0, h0 = cfg["cin0"], cfg["h0"]
    layers = cfg["layers"]
    oh_f = cfg["oh_f"]
    n_cls = cfg["n_classes"]
    wpl_off, wpl_rows, blin_off = cfg["wpl_off"], cfg["wpl_rows"], cfg["blin_off"]
    f32, bf16 = jnp.float32, jnp.bfloat16

    def rows(ref, base, size, stride):
        # Static contiguous / stride-s sublane read of the padded activation scratch.
        if size == 1:
            return ref[base:base + 1, :]
        if stride == 1:
            return ref[base:base + size, :]
        return ref[pl.ds(base, size, stride=stride), :]

    def cat(blocks, axis):
        return blocks[0] if len(blocks) == 1 else jnp.concatenate(blocks, axis=axis)

    def kernel(x_ref, wbuf_ref, fbuf_ref, o_ref, *pads):
        # ---- stage the raw NCHW input into the layer-1 H-padded scratch (one full store) ----
        l0 = layers[0]
        z0 = jnp.zeros((l0["p"], l0["w"]), f32) if l0["p"] else None
        stage = []
        for n in range(N):
            for c in range(cin0):
                r0 = (n * cin0 + c) * h0
                if l0["p"]:
                    stage.append(z0)
                stage.append(x_ref[r0:r0 + h0, :])
                if l0["p"]:
                    stage.append(z0)
        pads[0][...] = cat(stage, axis=0)

        act = None
        for li, L in enumerate(layers):
            k, s, p, hp = L["k"], L["s"], L["p"], L["hp"]
            oh, ow, cout = L["oh"], L["ow"], L["cout"]
            pad_ref = pads[li]

            # Gathered operand: lane-concatenation of the stride-s row selections
            # -> a SINGLE bf16 MXU matmul per conv block (W padding is folded into
            #    the weight slab; H padding comes from the zero halo rows).
            blocks = []
            if li == 0:
                for c in range(cin0):
                    for i in range(k):
                        blocks.append(cat([rows(pad_ref, (n * cin0 + c) * hp + i, oh, s)
                                           for n in range(N)], axis=0))
            else:
                for i in range(k):
                    blocks.append(cat([rows(pad_ref, n * hp + i, oh, s)
                                       for n in range(N)], axis=0))
            gathered = cat(blocks, axis=-1).astype(bf16)            # (N*oh, K)

            wsl = wbuf_ref[L["w_off"]:L["w_off"] + L["w_rows"], 0:ow * cout]
            acc = jnp.dot(gathered, wsl, preferred_element_type=f32)
            bias = fbuf_ref[L["b_off"]:L["b_off"] + N * oh, 0:ow * cout]
            shift = fbuf_ref[L["sh_off"]:L["sh_off"] + N * oh, 0:ow * cout]
            # conv-bias (BN scale pre-folded), ReLU, BN shift -- full-shape, no broadcasts.
            act = jnp.maximum(acc + bias, 0.0) + shift

            # Stage this layer's output as the next layer's H-padded input
            # (built as a value -> one aligned full-ref store, no halo zeroing pass).
            if li + 1 < len(layers):
                nxt = layers[li + 1]
                zn = jnp.zeros((nxt["p"], ow * cout), f32) if nxt["p"] else None
                stage = []
                for n in range(N):
                    if nxt["p"]:
                        stage.append(zn)
                    stage.append(act[n * oh:(n + 1) * oh, :])
                    if nxt["p"]:
                        stage.append(zn)
                pads[li + 1][...] = cat(stage, axis=0)

        # ---- AdaptiveAvgPool2d(1) + Linear(64, n_classes) ----
        if oh_f == 1:
            pooled = act                                            # pooling is the identity
        else:
            pooled = cat([jnp.sum(act[n * oh_f:(n + 1) * oh_f, :], axis=0, keepdims=True)
                          for n in range(N)], axis=0) * (1.0 / oh_f)
        logits = jnp.dot(pooled.astype(bf16),
                         wbuf_ref[wpl_off:wpl_off + wpl_rows, 0:n_cls],
                         preferred_element_type=f32)
        o_ref[...] = logits + fbuf_ref[blin_off:blin_off + N, 0:n_cls]

    return kernel


def make_audio_classifier_forward(params, batch, height, width):
    cfg, wbuf, fbuf = prepare_fused_consts(params, batch, height, width)
    kernel = _make_kernel(cfg)
    vmem = pl.BlockSpec(memory_space=pltpu.MemorySpace.VMEM)

    call = pl.pallas_call(
        kernel,
        out_shape=jax.ShapeDtypeStruct((batch, cfg["n_classes"]), jnp.float32),
        in_specs=[vmem, vmem, vmem],
        out_specs=vmem,
        scratch_shapes=[pltpu.VMEM(shape, jnp.float32) for shape in cfg["pad_shapes"]],
    )
    cin0, h0, w0 = cfg["cin0"], cfg["h0"], cfg["w0"]

    def forward(x_nchw):
        # NCHW consumed directly by the kernel: only a free reshape, no transpose in XLA.
        x2 = x_nchw.astype(jnp.float32).reshape(batch * cin0 * h0, w0)
        return call(x2, wbuf, fbuf)

    return jax.jit(forward)


# ----------------------------------------------------------------------------
# Deterministic parameter init (mirrors the PyTorch __init__)
# ----------------------------------------------------------------------------
def kaiming_normal(key, cout, cin, kh, kw, a=0.1):
    fan_in = cin * kh * kw
    gain = (2.0 / (1.0 + a * a)) ** 0.5
    std = gain / fan_in ** 0.5
    return std * jax.random.normal(key, (cout, cin, kh, kw), dtype=jnp.float32)


def init_params(key):
    configs = [  # (cin, cout, k, stride, pad)
        (2, 8, 5, 2, 2),
        (8, 16, 3, 2, 1),
        (16, 32, 3, 2, 1),
        (32, 64, 3, 2, 1),
    ]
    keys = jax.random.split(key, len(configs) + 2)
    conv = []
    for idx, (cin, cout, k, s, p) in enumerate(configs):
        conv.append(dict(
            w_oihw=kaiming_normal(keys[idx], cout, cin, k, k, a=0.1),
            bias=jnp.zeros((cout,), jnp.float32),      # conv bias zeroed in __init__
            gamma=jnp.ones((cout,), jnp.float32),      # BatchNorm affine + running stats
            beta=jnp.zeros((cout,), jnp.float32),      #   exactly as right after __init__
            mean=jnp.zeros((cout,), jnp.float32),
            var=jnp.ones((cout,), jnp.float32),
            cin=cin, cout=cout, k=k, s=s, p=p))
    bound = 1.0 / (64 ** 0.5)                          # PyTorch Linear default init
    lin_w = jax.random.uniform(keys[-2], (12, 64), jnp.float32, -bound, bound)
    lin_b = jax.random.uniform(keys[-1], (12,), jnp.float32, -bound, bound)
    return dict(conv=conv, lin_w=lin_w, lin_b=lin_b)


# ----------------------------------------------------------------------------
# Pure-XLA reference (no Pallas) used to sanity-check the fused kernel
# ----------------------------------------------------------------------------
def reference_forward(x_nchw, params, eps=1e-5):
    x = jnp.transpose(x_nchw.astype(jnp.float32), (0, 2, 3, 1))
    for blk in params["conv"]:
        w_hwio = jnp.transpose(blk["w_oihw"], (2, 3, 1, 0))
        x = jax.lax.conv_general_dilated(
            x, w_hwio, window_strides=(blk["s"], blk["s"]),
            padding=[(blk["p"], blk["p"])] * 2,
            dimension_numbers=("NHWC", "HWIO", "NHWC"))
        x = jnp.maximum(x + blk["bias"], 0.0)
        scale = blk["gamma"] / jnp.sqrt(blk["var"] + eps)
        x = x * scale + (blk["beta"] - blk["mean"] * scale)
    pooled = jnp.mean(x, axis=(1, 2))
    return pooled @ params["lin_w"].T + params["lin_b"]


if __name__ == "__main__":
    key = jax.random.PRNGKey(0)
    k_x, k_p = jax.random.split(key)
    # batch=2, 2-channel (stereo mel-spectrogram) 16x16 input, as the module implies.
    N, C, H, W = 2, 2, 16, 16
    x = jax.random.normal(k_x, (N, C, H, W), dtype=jnp.float32)
    params = init_params(k_p)

    forward = make_audio_classifier_forward(params, N, H, W)
    out = jax.block_until_ready(forward(x))
    assert out.shape == (N, 12) and out.dtype == jnp.float32

    ref = jax.block_until_ready(reference_forward(x, params))
    max_err = float(jnp.max(jnp.abs(out - ref)))
    assert jnp.allclose(out, ref, atol=5e-2, rtol=5e-2), \
        f"kernel/reference mismatch: max abs err {max_err}"
    print("KERNEL_OK")
</pallas_src>

<mosaic_0001>
module attributes {stable_mosaic.version = 11 : i64} {
  func.func @kernel(%arg0: memref<64x16xf32, #tpu.memory_space<vmem>>, %arg1: memref<800x64xbf16, #tpu.memory_space<vmem>>, %arg2: memref<88x64xf32, #tpu.memory_space<vmem>>, %arg3: memref<2x12xf32, #tpu.memory_space<vmem>>, %arg4: memref<80x16xf32, #tpu.memory_space<vmem>>, %arg5: memref<20x64xf32, #tpu.memory_space<vmem>>, %arg6: memref<12x64xf32, #tpu.memory_space<vmem>>, %arg7: memref<8x64xf32, #tpu.memory_space<vmem>>) attributes {dimension_semantics = [], scalar_prefetch = 0 : i64, scratch_operands = 4 : i64, tpu.core_type = #tpu.core_type<tc>} {
    %cst = arith.constant 0.000000e+00 : f32
    %0 = vector.broadcast %cst : f32 to vector<2x16xf32>
    %c0 = arith.constant 0 : index
    %c0_0 = arith.constant 0 : index
    %1 = vector.load %arg0[%c0, %c0_0] : memref<64x16xf32, #tpu.memory_space<vmem>>, vector<16x16xf32>
    %c16 = arith.constant 16 : index
    %c0_1 = arith.constant 0 : index
    %2 = vector.load %arg0[%c16, %c0_1] : memref<64x16xf32, #tpu.memory_space<vmem>>, vector<16x16xf32>
    %c32 = arith.constant 32 : index
    %c0_2 = arith.constant 0 : index
    %3 = vector.load %arg0[%c32, %c0_2] : memref<64x16xf32, #tpu.memory_space<vmem>>, vector<16x16xf32>
    %c48 = arith.constant 48 : index
    %c0_3 = arith.constant 0 : index
    %4 = vector.load %arg0[%c48, %c0_3] : memref<64x16xf32, #tpu.memory_space<vmem>>, vector<16x16xf32>
    %5 = tpu.concatenate %0, %1, %0, %0, %2, %0, %0, %3, %0, %0, %4, %0 in 0 : vector<2x16xf32>, vector<16x16xf32>, vector<2x16xf32>, vector<2x16xf32>, vector<16x16xf32>, vector<2x16xf32>, vector<2x16xf32>, vector<16x16xf32>, vector<2x16xf32>, vector<2x16xf32>, vector<16x16xf32>, vector<2x16xf32> -> vector<80x16xf32>
    %c0_4 = arith.constant 0 : index
    %c0_5 = arith.constant 0 : index
    %6 = vector.load %arg4[%c0_4, %c0_5] : memref<80x16xf32, #tpu.memory_space<vmem>>, vector<80x16xf32>
    tpu.vector_store %arg4[%c0_4, %c0_5], %5 {strides = array<i32>} : memref<80x16xf32, #tpu.memory_space<vmem>>, vector<80x16xf32>,
    %c0_6 = arith.constant 0 : index
    %c0_7 = arith.constant 0 : index
    %7 = tpu.strided_load %arg4[%c0_6, %c0_7] {strides = array<i32: 2, 1>} : memref<80x16xf32, #tpu.memory_space<vmem>>, vector<8x16xf32>
    %c40 = arith.constant 40 : index
    %c0_8 = arith.constant 0 : index
    %8 = tpu.strided_load %arg4[%c40, %c0_8] {strides = array<i32: 2, 1>} : memref<80x16xf32, #tpu.memory_space<vmem>>, vector<8x16xf32>
    %9 = tpu.concatenate %7, %8 in 0 : vector<8x16xf32>, vector<8x16xf32> -> vector<16x16xf32>
    %c1 = arith.constant 1 : index
    %c0_9 = arith.constant 0 : index
    %10 = tpu.strided_load %arg4[%c1, %c0_9] {strides = array<i32: 2, 1>} : memref<80x16xf32, #tpu.memory_space<vmem>>, vector<8x16xf32>
    %c41 = arith.constant 41 : index
    %c0_10 = arith.constant 0 : index
    %11 = tpu.strided_load %arg4[%c41, %c0_10] {strides = array<i32: 2, 1>} : memref<80x16xf32, #tpu.memory_space<vmem>>, vector<8x16xf32>
    %12 = tpu.concatenate %10, %11 in 0 : vector<8x16xf32>, vector<8x16xf32> -> vector<16x16xf32>
    %c2 = arith.constant 2 : index
    %c0_11 = arith.constant 0 : index
    %13 = tpu.strided_load %arg4[%c2, %c0_11] {strides = array<i32: 2, 1>} : memref<80x16xf32, #tpu.memory_space<vmem>>, vector<8x16xf32>
    %c42 = arith.constant 42 : index
    %c0_12 = arith.constant 0 : index
    %14 = tpu.strided_load %arg4[%c42, %c0_12] {strides = array<i32: 2, 1>} : memref<80x16xf32, #tpu.memory_space<vmem>>, vector<8x16xf32>
    %15 = tpu.concatenate %13, %14 in 0 : vector<8x16xf32>, vector<8x16xf32> -> vector<16x16xf32>
    %c3 = arith.constant 3 : index
    %c0_13 = arith.constant 0 : index
    %16 = tpu.strided_load %arg4[%c3, %c0_13] {strides = array<i32: 2, 1>} : memref<80x16xf32, #tpu.memory_space<vmem>>, vector<8x16xf32>
    %c43 = arith.constant 43 : index
    %c0_14 = arith.constant 0 : index
    %17 = tpu.strided_load %arg4[%c43, %c0_14] {strides = array<i32: 2, 1>} : memref<80x16xf32, #tpu.memory_space<vmem>>, vector<8x16xf32>
    %18 = tpu.concatenate %16, %17 in 0 : vector<8x16xf32>, vector<8x16xf32> -> vector<16x16xf32>
    %c4 = arith.constant 4 : index
    %c0_15 = arith.constant 0 : index
    %19 = tpu.strided_load %arg4[%c4, %c0_15] {strides = array<i32: 2, 1>} : memref<80x16xf32, #tpu.memory_space<vmem>>, vector<8x16xf32>
    %c44 = arith.constant 44 : index
    %c0_16 = arith.constant 0 : index
    %20 = tpu.strided_load %arg4[%c44, %c0_16] {strides = array<i32: 2, 1>} : memref<80x16xf32, #tpu.memory_space<vmem>>, vector<8x16xf32>
    %21 = tpu.concatenate %19, %20 in 0 : vector<8x16xf32>, vector<8x16xf32> -> vector<16x16xf32>
    %c20 = arith.constant 20 : index
    %c0_17 = arith.constant 0 : index
    %22 = tpu.strided_load %arg4[%c20, %c0_17] {strides = array<i32: 2, 1>} : memref<80x16xf32, #tpu.memory_space<vmem>>, vector<8x16xf32>
    %c60 = arith.constant 60 : index
    %c0_18 = arith.constant 0 : index
    %23 = tpu.strided_load %arg4[%c60, %c0_18] {strides = array<i32: 2, 1>} : memref<80x16xf32, #tpu.memory_space<vmem>>, vector<8x16xf32>
    %24 = tpu.concatenate %22, %23 in 0 : vector<8x16xf32>, vector<8x16xf32> -> vector<16x16xf32>
    %c21 = arith.constant 21 : index
    %c0_19 = arith.constant 0 : index
    %25 = tpu.strided_load %arg4[%c21, %c0_19] {strides = array<i32: 2, 1>} : memref<80x16xf32, #tpu.memory_space<vmem>>, vector<8x16xf32>
    %c61 = arith.constant 61 : index
    %c0_20 = arith.constant 0 : index
    %26 = tpu.strided_load %arg4[%c61, %c0_20] {strides = array<i32: 2, 1>} : memref<80x16xf32, #tpu.memory_space<vmem>>, vector<8x16xf32>
    %27 = tpu.concatenate %25, %26 in 0 : vector<8x16xf32>, vector<8x16xf32> -> vector<16x16xf32>
    %c22 = arith.constant 22 : index
    %c0_21 = arith.constant 0 : index
    %28 = tpu.strided_load %arg4[%c22, %c0_21] {strides = array<i32: 2, 1>} : memref<80x16xf32, #tpu.memory_space<vmem>>, vector<8x16xf32>
    %c62 = arith.constant 62 : index
    %c0_22 = arith.constant 0 : index
    %29 = tpu.strided_load %arg4[%c62, %c0_22] {strides = array<i32: 2, 1>} : memref<80x16xf32, #tpu.memory_space<vmem>>, vector<8x16xf32>
    %30 = tpu.concatenate %28, %29 in 0 : vector<8x16xf32>, vector<8x16xf32> -> vector<16x16xf32>
    %c23 = arith.constant 23 : index
    %c0_23 = arith.constant 0 : index
    %31 = tpu.strided_load %arg4[%c23, %c0_23] {strides = array<i32: 2, 1>} : memref<80x16xf32, #tpu.memory_space<vmem>>, vector<8x16xf32>
    %c63 = arith.constant 63 : index
    %c0_24 = arith.constant 0 : index
    %32 = tpu.strided_load %arg4[%c63, %c0_24] {strides = array<i32: 2, 1>} : memref<80x16xf32, #tpu.memory_space<vmem>>, vector<8x16xf32>
    %33 = tpu.concatenate %31, %32 in 0 : vector<8x16xf32>, vector<8x16xf32> -> vector<16x16xf32>
    %c24 = arith.constant 24 : index
    %c0_25 = arith.constant 0 : index
    %34 = tpu.strided_load %arg4[%c24, %c0_25] {strides = array<i32: 2, 1>} : memref<80x16xf32, #tpu.memory_space<vmem>>, vector<8x16xf32>
    %c64 = arith.constant 64 : index
    %c0_26 = arith.constant 0 : index
    %35 = tpu.strided_load %arg4[%c64, %c0_26] {strides = array<i32: 2, 1>} : memref<80x16xf32, #tpu.memory_space<vmem>>, vector<8x16xf32>
    %36 = tpu.concatenate %34, %35 in 0 : vector<8x16xf32>, vector<8x16xf32> -> vector<16x16xf32>
    %37 = tpu.concatenate %9, %12, %15, %18, %21, %24, %27, %30, %33, %36 in 1 : vector<16x16xf32>, vector<16x16xf32>, vector<16x16xf32>, vector<16x16xf32>, vector<16x16xf32>, vector<16x16xf32>, vector<16x16xf32>, vector<16x16xf32>, vector<16x16xf32>, vector<16x16xf32> -> vector<16x160xf32>
    %38 = arith.truncf %37 : vector<16x160xf32> to vector<16x160xbf16>
    %c0_27 = arith.constant 0 : index
    %c0_28 = arith.constant 0 : index
    %39 = vector.load %arg1[%c0_27, %c0_28] : memref<800x64xbf16, #tpu.memory_space<vmem>>, vector<160x64xbf16>
    %cst_29 = arith.constant dense<0.000000e+00> : vector<16x64xf32>
    %40 = tpu.matmul %38, %39, %cst_29 {dimension_numbers = #tpu.dot_dimension_numbers<[1], [0], [0], [1], [0, 0, 1, 1], [], []>} : vector<16x160xbf16>, vector<160x64xbf16>, vector<16x64xf32> -> vector<16x64xf32>
    %c0_30 = arith.constant 0 : index
    %c0_31 = arith.constant 0 : index
    %41 = vector.load %arg2[%c0_30, %c0_31] : memref<88x64xf32, #tpu.memory_space<vmem>>, vector<16x64xf32>
    %c16_32 = arith.constant 16 : index
    %c0_33 = arith.constant 0 : index
    %42 = vector.load %arg2[%c16_32, %c0_33] : memref<88x64xf32, #tpu.memory_space<vmem>>, vector<16x64xf32>
    %43 = arith.addf %40, %41 : vector<16x64xf32>
    %cst_34 = arith.constant 0.000000e+00 : f32
    %44 = vector.broadcast %cst_34 : f32 to vector<16x64xf32>
    %45 = arith.maximumf %43, %44 : vector<16x64xf32>
    %46 = arith.addf %45, %42 : vector<16x64xf32>
    %cst_35 = arith.constant 0.000000e+00 : f32
    %47 = vector.broadcast %cst_35 : f32 to vector<1x64xf32>
    %48 = vector.extract_strided_slice %46 {offsets = [0, 0], sizes = [8, 64], strides = [1, 1]} : vector<16x64xf32> to vector<8x64xf32>
    %49 = vector.extract_strided_slice %46 {offsets = [8, 0], sizes = [8, 64], strides = [1, 1]} : vector<16x64xf32> to vector<8x64xf32>
    %50 = tpu.concatenate %47, %48, %47, %47, %49, %47 in 0 : vector<1x64xf32>, vector<8x64xf32>, vector<1x64xf32>, vector<1x64xf32>, vector<8x64xf32>, vector<1x64xf32> -> vector<20x64xf32>
    %c0_36 = arith.constant 0 : index
    %c0_37 = arith.constant 0 : index
    %51 = vector.load %arg5[%c0_36, %c0_37] : memref<20x64xf32, #tpu.memory_space<vmem>>, vector<20x64xf32>
    tpu.vector_store %arg5[%c0_36, %c0_37], %50 {strides = array<i32>} : memref<20x64xf32, #tpu.memory_space<vmem>>, vector<20x64xf32>,
    %c0_38 = arith.constant 0 : index
    %c0_39 = arith.constant 0 : index
    %52 = tpu.strided_load %arg5[%c0_38, %c0_39] {strides = array<i32: 2, 1>} : memref<20x64xf32, #tpu.memory_space<vmem>>, vector<4x64xf32>
    %c10 = arith.constant 10 : index
    %c0_40 = arith.constant 0 : index
    %53 = tpu.strided_load %arg5[%c10, %c0_40] {strides = array<i32: 2, 1>} : memref<20x64xf32, #tpu.memory_space<vmem>>, vector<4x64xf32>
    %54 = tpu.concatenate %52, %53 in 0 : vector<4x64xf32>, vector<4x64xf32> -> vector<8x64xf32>
    %c1_41 = arith.constant 1 : index
    %c0_42 = arith.constant 0 : index
    %55 = tpu.strided_load %arg5[%c1_41, %c0_42] {strides = array<i32: 2, 1>} : memref<20x64xf32, #tpu.memory_space<vmem>>, vector<4x64xf32>
    %c11 = arith.constant 11 : index
    %c0_43 = arith.constant 0 : index
    %56 = tpu.strided_load %arg5[%c11, %c0_43] {strides = array<i32: 2, 1>} : memref<20x64xf32, #tpu.memory_space<vmem>>, vector<4x64xf32>
    %57 = tpu.concatenate %55, %56 in 0 : vector<4x64xf32>, vector<4x64xf32> -> vector<8x64xf32>
    %c2_44 = arith.constant 2 : index
    %c0_45 = arith.constant 0 : index
    %58 = tpu.strided_load %arg5[%c2_44, %c0_45] {strides = array<i32: 2, 1>} : memref<20x64xf32, #tpu.memory_space<vmem>>, vector<4x64xf32>
    %c12 = arith.constant 12 : index
    %c0_46 = arith.constant 0 : index
    %59 = tpu.strided_load %arg5[%c12, %c0_46] {strides = array<i32: 2, 1>} : memref<20x64xf32, #tpu.memory_space<vmem>>, vector<4x64xf32>
    %60 = tpu.concatenate %58, %59 in 0 : vector<4x64xf32>, vector<4x64xf32> -> vector<8x64xf32>
    %61 = tpu.concatenate %54, %57, %60 in 1 : vector<8x64xf32>, vector<8x64xf32>, vector<8x64xf32> -> vector<8x192xf32>
    %62 = arith.truncf %61 : vector<8x192xf32> to vector<8x192xbf16>
    %c160 = arith.constant 160 : index
    %c0_47 = arith.constant 0 : index
    %63 = vector.load %arg1[%c160, %c0_47] : memref<800x64xbf16, #tpu.memory_space<vmem>>, vector<192x64xbf16>
    %cst_48 = arith.constant dense<0.000000e+00> : vector<8x64xf32>
    %64 = tpu.matmul %62, %63, %cst_48 {dimension_numbers = #tpu.dot_dimension_numbers<[1], [0], [0], [1], [0, 0, 1, 1], [], []>} : vector<8x192xbf16>, vector<192x64xbf16>, vector<8x64xf32> -> vector<8x64xf32>
    %c32_49 = arith.constant 32 : index
    %c0_50 = arith.constant 0 : index
    %65 = vector.load %arg2[%c32_49, %c0_50] : memref<88x64xf32, #tpu.memory_space<vmem>>, vector<8x64xf32>
    %c40_51 = arith.constant 40 : index
    %c0_52 = arith.constant 0 : index
    %66 = vector.load %arg2[%c40_51, %c0_52] : memref<88x64xf32, #tpu.memory_space<vmem>>, vector<8x64xf32>
    %67 = arith.addf %64, %65 : vector<8x64xf32>
    %cst_53 = arith.constant 0.000000e+00 : f32
    %68 = vector.broadcast %cst_53 : f32 to vector<8x64xf32>
    %69 = arith.maximumf %67, %68 : vector<8x64xf32>
    %70 = arith.addf %69, %66 : vector<8x64xf32>
    %cst_54 = arith.constant 0.000000e+00 : f32
    %71 = vector.broadcast %cst_54 : f32 to vector<1x64xf32>
    %72 = vector.extract_strided_slice %70 {offsets = [0, 0], sizes = [4, 64], strides = [1, 1]} : vector<8x64xf32> to vector<4x64xf32>
    %73 = vector.extract_strided_slice %70 {offsets = [4, 0], sizes = [4, 64], strides = [1, 1]} : vector<8x64xf32> to vector<4x64xf32>
    %74 = tpu.concatenate %71, %72, %71, %71, %73, %71 in 0 : vector<1x64xf32>, vector<4x64xf32>, vector<1x64xf32>, vector<1x64xf32>, vector<4x64xf32>, vector<1x64xf32> -> vector<12x64xf32>
    %c0_55 = arith.constant 0 : index
    %c0_56 = arith.constant 0 : index
    %75 = vector.load %arg6[%c0_55, %c0_56] : memref<12x64xf32, #tpu.memory_space<vmem>>, vector<12x64xf32>
    tpu.vector_store %arg6[%c0_55, %c0_56], %74 {strides = array<i32>} : memref<12x64xf32, #tpu.memory_space<vmem>>, vector<12x64xf32>,
    %c0_57 = arith.constant 0 : index
    %c0_58 = arith.constant 0 : index
    %76 = tpu.strided_load %arg6[%c0_57, %c0_58] {strides = array<i32: 2, 1>} : memref<12x64xf32, #tpu.memory_space<vmem>>, vector<2x64xf32>
    %c6 = arith.constant 6 : index
    %c0_59 = arith.constant 0 : index
    %77 = tpu.strided_load %arg6[%c6, %c0_59] {strides = array<i32: 2, 1>} : memref<12x64xf32, #tpu.memory_space<vmem>>, vector<2x64xf32>
    %78 = tpu.concatenate %76, %77 in 0 : vector<2x64xf32>, vector<2x64xf32> -> vector<4x64xf32>
    %c1_60 = arith.constant 1 : index
    %c0_61 = arith.constant 0 : index
    %79 = tpu.strided_load %arg6[%c1_60, %c0_61] {strides = array<i32: 2, 1>} : memref<12x64xf32, #tpu.memory_space<vmem>>, vector<2x64xf32>
    %c7 = arith.constant 7 : index
    %c0_62 = arith.constant 0 : index
    %80 = tpu.strided_load %arg6[%c7, %c0_62] {strides = array<i32: 2, 1>} : memref<12x64xf32, #tpu.memory_space<vmem>>, vector<2x64xf32>
    %81 = tpu.concatenate %79, %80 in 0 : vector<2x64xf32>, vector<2x64xf32> -> vector<4x64xf32>
    %c2_63 = arith.constant 2 : index
    %c0_64 = arith.constant 0 : index
    %82 = tpu.strided_load %arg6[%c2_63, %c0_64] {strides = array<i32: 2, 1>} : memref<12x64xf32, #tpu.memory_space<vmem>>, vector<2x64xf32>
    %c8 = arith.constant 8 : index
    %c0_65 = arith.constant 0 : index
    %83 = tpu.strided_load %arg6[%c8, %c0_65] {strides = array<i32: 2, 1>} : memref<12x64xf32, #tpu.memory_space<vmem>>, vector<2x64xf32>
    %84 = tpu.concatenate %82, %83 in 0 : vector<2x64xf32>, vector<2x64xf32> -> vector<4x64xf32>
    %85 = tpu.concatenate %78, %81, %84 in 1 : vector<4x64xf32>, vector<4x64xf32>, vector<4x64xf32> -> vector<4x192xf32>
    %86 = arith.truncf %85 : vector<4x192xf32> to vector<4x192xbf16>
    %c352 = arith.constant 352 : index
    %c0_66 = arith.constant 0 : index
    %87 = vector.load %arg1[%c352, %c0_66] : memref<800x64xbf16, #tpu.memory_space<vmem>>, vector<192x64xbf16>
    %cst_67 = arith.constant dense<0.000000e+00> : vector<4x64xf32>
    %88 = tpu.matmul %86, %87, %cst_67 {dimension_numbers = #tpu.dot_dimension_numbers<[1], [0], [0], [1], [0, 0, 1, 1], [], []>} : vector<4x192xbf16>, vector<192x64xbf16>, vector<4x64xf32> -> vector<4x64xf32>
    %c48_68 = arith.constant 48 : index
    %c0_69 = arith.constant 0 : index
    %89 = vector.load %arg2[%c48_68, %c0_69] : memref<88x64xf32, #tpu.memory_space<vmem>>, vector<4x64xf32>
    %c56 = arith.constant 56 : index
    %c0_70 = arith.constant 0 : index
    %90 = vector.load %arg2[%c56, %c0_70] : memref<88x64xf32, #tpu.memory_space<vmem>>, vector<4x64xf32>
    %91 = arith.addf %88, %89 : vector<4x64xf32>
    %cst_71 = arith.constant 0.000000e+00 : f32
    %92 = vector.broadcast %cst_71 : f32 to vector<4x64xf32>
    %93 = arith.maximumf %91, %92 : vector<4x64xf32>
    %94 = arith.addf %93, %90 : vector<4x64xf32>
    %cst_72 = arith.constant 0.000000e+00 : f32
    %95 = vector.broadcast %cst_72 : f32 to vector<1x64xf32>
    %96 = vector.extract_strided_slice %94 {offsets = [0, 0], sizes = [2, 64], strides = [1, 1]} : vector<4x64xf32> to vector<2x64xf32>
    %97 = vector.extract_strided_slice %94 {offsets = [2, 0], sizes = [2, 64], strides = [1, 1]} : vector<4x64xf32> to vector<2x64xf32>
    %98 = tpu.concatenate %95, %96, %95, %95, %97, %95 in 0 : vector<1x64xf32>, vector<2x64xf32>, vector<1x64xf32>, vector<1x64xf32>, vector<2x64xf32>, vector<1x64xf32> -> vector<8x64xf32>
    %c0_73 = arith.constant 0 : index
    %c0_74 = arith.constant 0 : index
    %99 = vector.load %arg7[%c0_73, %c0_74] : memref<8x64xf32, #tpu.memory_space<vmem>>, vector<8x64xf32>
    tpu.vector_store %arg7[%c0_73, %c0_74], %98 {strides = array<i32>} : memref<8x64xf32, #tpu.memory_space<vmem>>, vector<8x64xf32>,
    %c0_75 = arith.constant 0 : index
    %c0_76 = arith.constant 0 : index
    %100 = vector.load %arg7[%c0_75, %c0_76] : memref<8x64xf32, #tpu.memory_space<vmem>>, vector<1x64xf32>
    %c4_77 = arith.constant 4 : index
    %c0_78 = arith.constant 0 : index
    %101 = vector.load %arg7[%c4_77, %c0_78] : memref<8x64xf32, #tpu.memory_space<vmem>>, vector<1x64xf32>
    %102 = tpu.concatenate %100, %101 in 0 : vector<1x64xf32>, vector<1x64xf32> -> vector<2x64xf32>
    %c1_79 = arith.constant 1 : index
    %c0_80 = arith.constant 0 : index
    %103 = vector.load %arg7[%c1_79, %c0_80] : memref<8x64xf32, #tpu.memory_space<vmem>>, vector<1x64xf32>
    %c5 = arith.constant 5 : index
    %c0_81 = arith.constant 0 : index
    %104 = vector.load %arg7[%c5, %c0_81] : memref<8x64xf32, #tpu.memory_space<vmem>>, vector<1x64xf32>
    %105 = tpu.concatenate %103, %104 in 0 : vector<1x64xf32>, vector<1x64xf32> -> vector<2x64xf32>
    %c2_82 = arith.constant 2 : index
    %c0_83 = arith.constant 0 : index
    %106 = vector.load %arg7[%c2_82, %c0_83] : memref<8x64xf32, #tpu.memory_space<vmem>>, vector<1x64xf32>
    %c6_84 = arith.constant 6 : index
    %c0_85 = arith.constant 0 : index
    %107 = vector.load %arg7[%c6_84, %c0_85] : memref<8x64xf32, #tpu.memory_space<vmem>>, vector<1x64xf32>
    %108 = tpu.concatenate %106, %107 in 0 : vector<1x64xf32>, vector<1x64xf32> -> vector<2x64xf32>
    %109 = tpu.concatenate %102, %105, %108 in 1 : vector<2x64xf32>, vector<2x64xf32>, vector<2x64xf32> -> vector<2x192xf32>
    %110 = arith.truncf %109 : vector<2x192xf32> to vector<2x192xbf16>
    %c544 = arith.constant 544 : index
    %c0_86 = arith.constant 0 : index
    %111 = vector.load %arg1[%c544, %c0_86] : memref<800x64xbf16, #tpu.memory_space<vmem>>, vector<192x64xbf16>
    %cst_87 = arith.constant dense<0.000000e+00> : vector<2x64xf32>
    %112 = tpu.matmul %110, %111, %cst_87 {dimension_numbers = #tpu.dot_dimension_numbers<[1], [0], [0], [1], [0, 0, 1, 1], [], []>} : vector<2x192xbf16>, vector<192x64xbf16>, vector<2x64xf32> -> vector<2x64xf32>
    %c64_88 = arith.constant 64 : index
    %c0_89 = arith.constant 0 : index
    %113 = vector.load %arg2[%c64_88, %c0_89] : memref<88x64xf32, #tpu.memory_space<vmem>>, vector<2x64xf32>
    %c72 = arith.constant 72 : index
    %c0_90 = arith.constant 0 : index
    %114 = vector.load %arg2[%c72, %c0_90] : memref<88x64xf32, #tpu.memory_space<vmem>>, vector<2x64xf32>
    %115 = arith.addf %112, %113 : vector<2x64xf32>
    %cst_91 = arith.constant 0.000000e+00 : f32
    %116 = vector.broadcast %cst_91 : f32 to vector<2x64xf32>
    %117 = arith.maximumf %115, %116 : vector<2x64xf32>
    %118 = arith.addf %117, %114 : vector<2x64xf32>
    %119 = arith.truncf %118 : vector<2x64xf32> to vector<2x64xbf16>
    %c736 = arith.constant 736 : index
    %c0_92 = arith.constant 0 : index
    %120 = vector.load %arg1[%c736, %c0_92] : memref<800x64xbf16, #tpu.memory_space<vmem>>, vector<64x12xbf16>
    %cst_93 = arith.constant dense<0.000000e+00> : vector<2x12xf32>
    %121 = tpu.matmul %119, %120, %cst_93 {dimension_numbers = #tpu.dot_dimension_numbers<[1], [0], [0], [1], [0, 0, 1, 1], [], []>} : vector<2x64xbf16>, vector<64x12xbf16>, vector<2x12xf32> -> vector<2x12xf32>
    %c80 = arith.constant 80 : index
    %c0_94 = arith.constant 0 : index
    %122 = vector.load %arg2[%c80, %c0_94] : memref<88x64xf32, #tpu.memory_space<vmem>>, vector<2x12xf32>
    %123 = arith.addf %121, %122 : vector<2x12xf32>
    %c0_95 = arith.constant 0 : index
    %c0_96 = arith.constant 0 : index
    %124 = vector.load %arg3[%c0_95, %c0_96] : memref<2x12xf32, #tpu.memory_space<vmem>>, vector<2x12xf32>
    tpu.vector_store %arg3[%c0_95, %c0_96], %123 {strides = array<i32>} : memref<2x12xf32, #tpu.memory_space<vmem>>, vector<2x12xf32>,
    return
  }
}

</mosaic_0001>

<bundles_post_ra>
// kernel: forward.1
= control target key start
LH: loop header
LB: loop body
LE: loop exit
PB: predicated region body
PF: predicated region fallthrough
CT: control target
= control target key end

     0   :  { %8 = vsyncpa [#allocation7], 0  ;;  %s1513_s0 = inlined_call_operand.hbm [shape: f32[64,16], index: 0, kind: input, shape index: {}]   ;;  %s1514_s1 = inlined_call_operand.hbm [shape: bf16[800,64], index: 1, kind: input, shape index: {}]   ;;  %s1515_s2 = inlined_call_operand.hbm [shape: f32[88,64], index: 2, kind: input, shape index: {}]   ;;  %s1516_s3 = inlined_call_operand.hbm [shape: f32[2,12], index: 3, kind: output, shape index: {}]  }
   0x1   :  { %9 = vsyncpa [#allocation10], 0 }
   0x2   :  { %10 = vsyncpa [#allocation8], 0  ;;  %s1304_s12 = smov [#allocation9]   ;;  %s1210_s16 = scalar_lea.hbm %s1514_s1, 6400 }
   0x3   :  { %s28_s13 = sshll.u32 %s1304_s12, 4  ;;  %p1211_p0 = scmp.ne.s32.totalorder %s1514_s1, %s1210_s16  ;;  %s29_s13 = int_to_ptr.vmem [resolvable:$true] %s28_s13 }
   0x4   :  { %p1214_p1 = scmp.lt.u32.totalorder %s1210_s16, %s1514_s1 }
   0x6   :  { %p1216_p2 = pnand %p1214_p1, %p1211_p0 }
   0x8   :  { %1219 = shalt.err (!%p1216_p2)
}
   0x9   :  { %s1220_s21 = scalar_lea.vmem %s29_s13, 6400  ;;  %p1225_p4 = scmp.lt.s32.totalorder %s29_s13, %s29_s13 }
   0xa   :  { %p1221_p3 = scmp.ne.s32.totalorder %s29_s13, %s1220_s21  ;;  %p1226_p5 = scmp.lt.s32.totalorder %s1220_s21, %s1220_s21 }
   0xc   :  { %p1227_p6 = por %p1226_p5, %p1225_p4 }
   0xe   :  { %p1228_p7 = pnand %p1227_p6, %p1221_p3 }
  0x10   :  { %1231 = shalt.err (!%p1228_p7)
}
  0x11   :  { %s1305_s22 = smov 64   ;;  %s1306_s23 = smov 4  }
  0x12   :  { %34 = dma.hbm_to_vmem [thread:$0]  %s1514_s1, 6400, %s29_s13, [#allocation10], %s1305_s22, %s1305_s22, %s1306_s23  }
  0x13   :  { %s1307_s26 = smov [#allocation6]   ;;  %s1232_s30 = scalar_lea.hbm %s1513_s0, 1024 }
  0x14   :  { %s16_s27 = sshll.u32 %s1307_s26, 4  ;;  %p1233_p8 = scmp.ne.s32.totalorder %s1513_s0, %s1232_s30  ;;  %s17_s27 = int_to_ptr.vmem [resolvable:$true] %s16_s27 }
  0x15   :  { %p1236_p9 = scmp.lt.u32.totalorder %s1232_s30, %s1513_s0 }
  0x17   :  { %p1238_p10 = pnand %p1236_p9, %p1233_p8 }
  0x19   :  { %1241 = shalt.err (!%p1238_p10)
}
  0x1a   :  { %s1242_s8 = scalar_lea.vmem %s17_s27, 1024  ;;  %p1247_p12 = scmp.lt.s32.totalorder %s17_s27, %s17_s27 }
  0x1b   :  { %p1243_p11 = scmp.ne.s32.totalorder %s17_s27, %s1242_s8  ;;  %p1248_p13 = scmp.lt.s32.totalorder %s1242_s8, %s1242_s8 }
  0x1d   :  { %p1249_p0 = por %p1248_p13, %p1247_p12 }
  0x1f   :  { %p1250_p1 = pnand %p1249_p0, %p1243_p11 }
  0x21   :  { %1253 = shalt.err (!%p1250_p1)
}
  0x22   :  { %s1308_s1 = smov 128   ;;  %s1309_s9 = smov 8  }
  0x23   :  { %22 = dma.hbm_to_vmem [thread:$0]  %s1513_s0, 1024, %s17_s27, [#allocation7], %s1308_s1, %s1308_s1, %s1309_s9  }
  0x24   :  { %s1310_s12 = smov [#allocation11]   ;;  %s1254_s16 = scalar_lea.hbm %s1515_s2, 1408 }
  0x25   :  { %s40_s13 = sshll.u32 %s1310_s12, 4  ;;  %p1255_p2 = scmp.ne.s32.totalorder %s1515_s2, %s1254_s16  ;;  %s41_s13 = int_to_ptr.vmem [resolvable:$true] %s40_s13 }
  0x26   :  { %p1258_p3 = scmp.lt.u32.totalorder %s1254_s16, %s1515_s2 }
  0x28   :  { %p1260_p4 = pnand %p1258_p3, %p1255_p2 }
  0x2a   :  { %1263 = shalt.err (!%p1260_p4)
}
  0x2b   :  { %s1264_s21 = scalar_lea.vmem %s41_s13, 1408  ;;  %p1269_p6 = scmp.lt.s32.totalorder %s41_s13, %s41_s13 }
  0x2c   :  { %p1265_p5 = scmp.ne.s32.totalorder %s41_s13, %s1264_s21  ;;  %p1270_p7 = scmp.lt.s32.totalorder %s1264_s21, %s1264_s21 }
  0x2e   :  { %p1271_p8 = por %p1270_p7, %p1269_p6 }
  0x30   :  { %p1272_p9 = pnand %p1271_p8, %p1265_p5 }
  0x32   :  { %1275 = shalt.err (!%p1272_p9)
}
  0x33   :  { %46 = dma.hbm_to_vmem [thread:$0]  %s1515_s2, 1408, %s41_s13, [#allocation10], %s1308_s1, %s1308_s1, %s1309_s9  }
  0x34   :  { %1298 = dma.done.wait [#allocation7], 1024  }
  0x35   :  { %1299 = vsyncadd [#allocation7], 4294966272 }
  0x36   :  { %1300 = dma.done.wait [#allocation10], 7808  }
  0x37   :  { %1301 = vsyncadd [#allocation10], 4294959488  ;;  %v1311_v0 = vmov 0   ;;  %vm67_vm0 = vcmask 1041408   ;;  %v57_v1 = vld [vmem:[#allocation6] sm:$0xff]  ;;  %v58_v2 = vld [vmem:[#allocation6 + $0x8] sm:$0xff] }
  0x38   :  { %335 = vmatprep.subr.bf16.mxu0 %v1311_v0  ;;  %528 = vmatprep.subr.bf16.mxu1 %v1311_v0  ;;  %v61_v3 = vld [vmem:[#allocation6 + $0x20] sm:$0xff]  ;;  %vm110_vm1 = vcmask 130048   ;;  %vm76_vm2 = vcmask 1045504   ;;  %vm101_vm3 = vcmask 1043456   ;;  %v62_v4 = vld [vmem:[#allocation6 + $0x28] sm:$0xff]  ;;  %v68_v5 = vrot.slane %v57_v1, 6 }
  0x39   :  { %v69_v6 = vrot.slane %v58_v2, 6  ;;  %v85_v7 = vrot.slane %v61_v3, 6  ;;  %v59_v8 = vld [vmem:[#allocation6 + $0x10] sm:$0xff]  ;;  %v86_v10 = vrot.slane %v62_v4, 6  ;;  %v60_v13 = vld [vmem:[#allocation6 + $0x18] sm:$0xff]  ;;  %v1160_v15 = vld [vmem:[#allocation9] sm:$0xff]  }
  0x3a   :  { %v63_v9 = vld [vmem:[#allocation6 + $0x30] sm:$0xff]  ;;  %v77_v11 = vrot.slane %v59_v8, 2  ;;  %v64_v14 = vld [vmem:[#allocation6 + $0x38] sm:$0xff]  ;;  %v99_v17 = vsel %vm67_vm0, 0.0, %v68_v5  ;;  %v78_v23 = vrot.slane %v60_v13, 2  ;;  %336 = vmatpush1.bf16.msra.mxu0 %v1160_v15  ;;  %v1161_v24 = vld [vmem:[#allocation9 + $0x8] sm:$0xff]  }
  0x3b   :  { %v93_v12 = vrot.slane %v63_v9, 2  ;;  %v70_v16 = vsel %vm67_vm0, %v68_v5, %v69_v6  ;;  %v105_v18 = vsel %vm67_vm0, 0.0, %v85_v7  ;;  %v100_v19 = vsel %vm67_vm0, %v69_v6, 0.0  ;;  %111 = vst.msk [vmem:[#allocation2] sm:$0xff] %vm110_vm1, %v99_v17  ;;  %337 = vmatprep.subr.bf16.mxu0 %v1311_v0  ;;  %v1162_v33 = vld [vmem:[#allocation9 + $0x10] sm:$0xff]   ;;  %v1163_v35 = vld [vmem:[#allocation9 + $0x18] sm:$0xff]  }
  0x3c   :  { %v87_v20 = vsel %vm67_vm0, %v85_v7, %v86_v10  ;;  %112 = vst.msk [vmem:[#allocation2 + $0x8] sm:$0xff] %vm110_vm1, %v70_v16  ;;  %116 = vst.msk [vmem:[#allocation2 + $0x28] sm:$0xff] %vm110_vm1, %v105_v18  ;;  %v102_v21 = vsel %vm101_vm3, %v100_v19, 0.0  ;;  %v106_v22 = vsel %vm67_vm0, %v86_v10, 0.0  ;;  %v94_v27 = vrot.slane %v64_v14, 2  ;;  %s1312_s2 = smov 16  }
  0x3d   :  { %117 = vst.msk [vmem:[#allocation2 + $0x30] sm:$0xff] %vm110_vm1, %v87_v20  ;;  %v103_v25 = vsel %vm76_vm2, %v102_v21, %v77_v11  ;;  %v107_v26 = vsel %vm101_vm3, %v106_v22, 0.0  ;;  %v79_v29 = vsel %vm76_vm2, %v77_v11, %v78_v23  ;;  %v104_v30 = vsel %vm76_vm2, %v78_v23, 0.0  ;;  %v1164_v48 = vld [vmem:[#allocation9 + $0x20] sm:$0xff]   ;;  %s1313_s24 = smov 48   ;;  %s1314_s25 = smov 32  }
  0x3e   :  { %v108_v28 = vsel %vm76_vm2, %v107_v26, %v93_v12  ;;  %113 = vst.msk [vmem:[#allocation2 + $0x10] sm:$0xff] %vm110_vm1, %v103_v25  ;;  %v95_v31 = vsel %vm76_vm2, %v93_v12, %v94_v27  ;;  %v109_v32 = vsel %vm76_vm2, %v94_v27, 0.0  ;;  %114 = vst.msk [vmem:[#allocation2 + $0x18] sm:$0xff] %vm110_vm1, %v79_v29  ;;  %338 = vmatpush1.bf16.msra.mxu0 %v1161_v24  ;;  %v1165_v53 = vld [vmem:[#allocation9 + $0x28] sm:$0xff]   ;;  %v1166_v59 = vld [vmem:[#allocation9 + $0x30] sm:$0xff]   ;;  %s1315_s26 = smov 80  }
  0x3f   :  { %118 = vst.msk [vmem:[#allocation2 + $0x38] sm:$0xff] %vm110_vm1, %v108_v28  ;;  %115 = vst.msk [vmem:[#allocation2 + $0x20] sm:$0xff] %vm110_vm1, %v104_v30  ;;  %339 = vmatprep.subr.bf16.mxu0 %v1311_v0  ;;  %s1316_s27 = smov 96   ;;  %v1167_v62 = vld [vmem:[#allocation9 + $0x38] sm:$0xff]   ;;  %s1317_s28 = smov 112   ;;  %v1168_v63 = vld [vmem:[#allocation9 + $0x40] sm:$0xff]  }
  0x40   :  { %119 = vst.msk [vmem:[#allocation2 + $0x40] sm:$0xff] %vm110_vm1, %v95_v31  ;;  %120 = vst.msk [vmem:[#allocation2 + $0x48] sm:$0xff] %vm110_vm1, %v109_v32  ;;  %v1169_v1 = vld [vmem:[#allocation9 + $0x48] sm:$0xff]   ;;  %vm226_vm4 = vcmask 261120   ;;  %vm229_vm5 = vcmask 392192   ;;  %vm232_vm6 = vcmask 523264  }
  0x41   :  { %vm235_vm7 = vcmask 654336   ;;  %vm238_vm8 = vcmask 785408   ;;  %vm241_vm9 = vcmask 916480   ;;  %vm386_vm10 = vcmask 1040384  }
  0x42   :  { %340 = vmatpush1.bf16.msra.mxu0 %v1162_v33  ;;  %vm390_vm11 = vcmask 1042432   ;;  %vm395_vm12 = vcmask 519168   ;;  %vm576_vm13 = vcmask 1044480   ;;  %vm579_vm14 = vcmask 1046528  }
  0x43   :  { %v125_v34 = vld [vmem:[#allocation2 + $0x1] ss:$2 sm:$0xff]  ;;  %341 = vmatprep.subr.bf16.mxu0 %v1311_v0  ;;  %v121_v6 = vld [vmem:[#allocation2] ss:$2 sm:$0xff]  ;;  %vm1319_vm15 = vmmov 0  }
  0x44   :  { %v127_v36 = vld [vmem:[#allocation2 + $0x29] ss:$2 sm:$0xff]  ;;  %v123_v7 = vld [vmem:[#allocation2 + $0x28] ss:$2 sm:$0xff] }
  0x45   :  { %v1120_v37 = vpack.i.bf16 %v127_v36, %v125_v34  ;;  %v133_v38 = vld [vmem:[#allocation2 + $0x3] ss:$2 sm:$0xff]  ;;  %v129_v39 = vld [vmem:[#allocation2 + $0x2] ss:$2 sm:$0xff] }
  0x46   :  { %v137_v40 = vld [vmem:[#allocation2 + $0x4] ss:$2 sm:$0xff]  ;;  %v135_v41 = vld [vmem:[#allocation2 + $0x2b] ss:$2 sm:$0xff]  ;;  %v141_v46 = vld [vmem:[#allocation2 + $0x14] ss:$2 sm:$0xff]  ;;  %342 = vmatpush1.bf16.msra.mxu0 %v1163_v35 }
  0x47   :  { %v131_v42 = vld [vmem:[#allocation2 + $0x2a] ss:$2 sm:$0xff]  ;;  %1121 = vrot.lane.b32.xlu0 %v1120_v37, %s1312_s2  ;;  %v1130_v44 = vpack.i.bf16 %v135_v41, %v133_v38  ;;  %v145_v50 = vld [vmem:[#allocation2 + $0x15] ss:$2 sm:$0xff]  ;;  %343 = vmatprep.subr.bf16.mxu0 %v1311_v0 }
  0x48   :  { %v139_v43 = vld [vmem:[#allocation2 + $0x2c] ss:$2 sm:$0xff]  ;;  %v1125_v45 = vpack.i.bf16 %v131_v42, %v129_v39  ;;  %v143_v47 = vld [vmem:[#allocation2 + $0x3c] ss:$2 sm:$0xff]  ;;  %v147_v51 = vld [vmem:[#allocation2 + $0x3d] ss:$2 sm:$0xff] }
  0x49   :  { %1131 = vrot.lane.b32.xlu1 %v1130_v44, %s1313_s24  ;;  %v1135_v49 = vpack.i.bf16 %v139_v43, %v137_v40  ;;  %v1140_v52 = vpack.i.bf16 %v143_v47, %v141_v46  ;;  %v157_v54 = vld [vmem:[#allocation2 + $0x18] ss:$2 sm:$0xff]  ;;  %v1150_v56 = vpack.i.bf16 %v147_v51, %v145_v50  ;;  %v153_v31 = vld [vmem:[#allocation2 + $0x17] ss:$2 sm:$0xff]  ;;  %v1173_v51 = vld [vmem:[#allocation9 + $0x68] sm:$0xff]  }
  0x4a   :  { %v159_v55 = vld [vmem:[#allocation2 + $0x40] ss:$2 sm:$0xff]  ;;  %344 = vmatpush1.bf16.msra.mxu0 %v1164_v48  ;;  %v155_v32 = vld [vmem:[#allocation2 + $0x3f] ss:$2 sm:$0xff]  ;;  %v1170_v48 = vld [vmem:[#allocation9 + $0x50] sm:$0xff]  }
  0x4b   :  { %1126 = vrot.lane.b32.xlu0 %v1125_v45, %s1314_s25  ;;  %v149_v57 = vld [vmem:[#allocation2 + $0x16] ss:$2 sm:$0xff]  ;;  %345 = vmatprep.subr.bf16.mxu0 %v1311_v0  ;;  %v1145_v60 = vpack.i.bf16 %v159_v55, %v157_v54  ;;  %v1177_v55 = vld [vmem:[#allocation9 + $0x88] sm:$0xff]  }
  0x4c   :  { %v151_v58 = vld [vmem:[#allocation2 + $0x3e] ss:$2 sm:$0xff]  ;;  %529 = vmatpush1.bf16.msra.mxu1 %v1170_v48 }
  0x4d   :  { %1136 = vrot.lane.b32.xlu1 %v1135_v49, %s1305_s22  ;;  %v1155_v61 = vpack.i.bf16 %v151_v58, %v149_v57  ;;  %v1171_v49 = vld [vmem:[#allocation9 + $0x58] sm:$0xff]   ;;  %530 = vmatprep.subr.bf16.mxu1 %v1311_v0  ;;  %v1172_v50 = vld [vmem:[#allocation9 + $0x60] sm:$0xff]  }
  0x4e   :  { %346 = vmatpush1.bf16.msra.mxu0 %v1165_v53  ;;  %v1175_v53 = vld [vmem:[#allocation9 + $0x78] sm:$0xff]   ;;  %v1176_v54 = vld [vmem:[#allocation9 + $0x80] sm:$0xff]  }
  0x4f   :  { %1141 = vrot.lane.b32.xlu0 %v1140_v52, %s1315_s26  ;;  %347 = vmatprep.subr.bf16.mxu0 %v1311_v0  ;;  %v1174_v52 = vld [vmem:[#allocation9 + $0x70] sm:$0xff]   ;;  %v1179_v57 = vld [vmem:[#allocation9 + $0x98] sm:$0xff]   ;;  %v1180_v58 = vld [vmem:[#allocation9 + $0xa0] sm:$0xff]  }
  0x50   :  { %531 = vmatpush1.bf16.msra.mxu1 %v1171_v49  ;;  %v452_v49 = vld [vmem:[#allocation11 + $0x28] sm:$0xff] }
  0x51   :  { %1151 = vrot.lane.b32.xlu1 %v1150_v56, %s1316_s27  ;;  %532 = vmatprep.subr.bf16.mxu1 %v1311_v0  ;;  %v1178_v56 = vld [vmem:[#allocation9 + $0x90] sm:$0xff]  }
  0x52   :  { %348 = vmatpush1.bf16.msra.mxu0 %v1166_v59  ;;  %v268_v59 = vld [vmem:[#allocation11] sm:$0xff] }
  0x53   :  { %1146 = vrot.lane.b32.xlu0 %v1145_v60, %s1312_s2  ;;  %349 = vmatprep.subr.bf16.mxu0 %v1311_v0 }
  0x54   :  { %533 = vmatpush1.bf16.msra.mxu1 %v1172_v50 }
  0x55   :  { %1156 = vrot.lane.b32.xlu1 %v1155_v61, %s1317_s28  ;;  %534 = vmatprep.subr.bf16.mxu1 %v1311_v0  ;;  %v269_v61 = vld [vmem:[#allocation11 + $0x8] sm:$0xff] }
  0x56   :  { %350 = vmatpush1.bf16.msra.mxu0 %v1167_v62 }
  0x57   :  { %351 = vmatprep.subr.bf16.mxu0 %v1311_v0 }
  0x58   :  { %535 = vmatpush1.bf16.msra.mxu1 %v1173_v51 }
  0x59   :  { %536 = vmatprep.subr.bf16.mxu1 %v1311_v0 }
  0x5a   :  { %352 = vmatpush1.bf16.msra.mxu0 %v1168_v63 }
  0x5b   :  { %353 = vmatprep.subr.bf16.mxu0 %v1311_v0 }
  0x5c   :  { %537 = vmatpush1.bf16.msra.mxu1 %v1174_v52 }
  0x5d   :  { %538 = vmatprep.subr.bf16.mxu1 %v1311_v0 }
  0x5e   :  { %354 = vmatpush1.bf16.msra.mxu0 %v1169_v1  ;;  %v270_v1 = vld [vmem:[#allocation11 + $0x10] sm:$0xff] }
  0x5f   :  { %715 = vmatprep.subr.bf16.mxu0 %v1311_v0 }
  0x60   :  { %539 = vmatpush1.bf16.msra.mxu1 %v1175_v53 }
  0x61   :  { %540 = vmatprep.subr.bf16.mxu1 %v1311_v0 }
  0x64   :  { %541 = vmatpush1.bf16.msra.mxu1 %v1176_v54 }
  0x65   :  { %542 = vmatprep.subr.bf16.mxu1 %v1311_v0 }
  0x68   :  { %543 = vmatpush1.bf16.msra.mxu1 %v1177_v55 }
  0x69   :  { %544 = vmatprep.subr.bf16.mxu1 %v1311_v0 }
  0x6c   :  { %545 = vmatpush1.bf16.msra.mxu1 %v1178_v56 }
  0x6d   :  { %546 = vmatprep.subr.bf16.mxu1 %v1311_v0 }
  0x70   :  { %547 = vmatpush1.bf16.msra.mxu1 %v1179_v57 }
  0x71   :  { %548 = vmatprep.subr.bf16.mxu1 %v1311_v0 }
  0x74   :  { %549 = vmatpush1.bf16.msra.mxu1 %v1180_v58 }
  0x75   :  { %550 = vmatprep.subr.bf16.mxu1 %v1311_v0 }
  0xb9   :  { %v1122_v2 = vpop.permute.xlu0 %1121 }
  0xba   :  { %v1124_v3 = vunpack.i.h.bf16 %v1122_v2  ;;  %v1123_v4 = vunpack.i.l.bf16 %v1122_v2 }
  0xbb   :  { %v1132_v5 = vpop.permute.xlu1 %1131 }
  0xbc   :  { %v1134_v11 = vunpack.i.h.bf16 %v1132_v5  ;;  %v1133_v12 = vunpack.i.l.bf16 %v1132_v5  ;;  %v224_v14 = vsel %vm110_vm1, %v121_v6, %v1123_v4  ;;  %v225_v15 = vsel %vm110_vm1, %v123_v7, %v1124_v3  ;;  %v271_v6 = vld [vmem:[#allocation11 + $0x18] sm:$0xff] }
  0xbd   :  { %v1127_v8 = vpop.permute.xlu0 %1126 }
  0xbe   :  { %v1129_v9 = vunpack.i.h.bf16 %v1127_v8  ;;  %v1128_v10 = vunpack.i.l.bf16 %v1127_v8 }
  0xbf   :  { %v1137_v13 = vpop.permute.xlu1 %1136 }
  0xc0   :  { %v1139_v16 = vunpack.i.h.bf16 %v1137_v13  ;;  %v1138_v17 = vunpack.i.l.bf16 %v1137_v13  ;;  %v227_v18 = vsel %vm226_vm4, %v224_v14, %v1128_v10  ;;  %v228_v19 = vsel %vm226_vm4, %v225_v15, %v1129_v9  ;;  %v1181_v15 = vld [vmem:[#allocation9 + $0xa8] sm:$0xff]  }
  0xc1   :  { %v1142_v20 = vpop.permute.xlu0 %1141  ;;  %v230_v21 = vsel %vm229_vm5, %v227_v18, %v1133_v12  ;;  %v231_v22 = vsel %vm229_vm5, %v228_v19, %v1134_v11  ;;  %551 = vmatpush1.bf16.msra.mxu1 %v1181_v15  ;;  %v1194_v15 = vld [vmem:[#allocation9 + $0x110] sm:$0xff]  }
  0xc2   :  { %v1144_v23 = vunpack.i.h.bf16 %v1142_v20  ;;  %v1143_v24 = vunpack.i.l.bf16 %v1142_v20  ;;  %v233_v26 = vsel %vm232_vm6, %v230_v21, %v1138_v17  ;;  %v234_v27 = vsel %vm232_vm6, %v231_v22, %v1139_v16  ;;  %894 = vmatprep.subr.bf16.mxu1 %v1311_v0 }
  0xc3   :  { %v1152_v25 = vpop.permute.xlu1 %1151 }
  0xc4   :  { %v1154_v28 = vunpack.i.h.bf16 %v1152_v25  ;;  %v1153_v29 = vunpack.i.l.bf16 %v1152_v25  ;;  %v236_v35 = vsel %vm235_vm7, %v233_v26, %v1143_v24  ;;  %v237_v36 = vsel %vm235_vm7, %v234_v27, %v1144_v23 }
  0xc5   :  { %v1147_v30 = vpop.permute.xlu0 %1146 }
  0xc6   :  { %v1149_v33 = vunpack.i.h.bf16 %v1147_v30  ;;  %v1148_v34 = vunpack.i.l.bf16 %v1147_v30  ;;  %v239_v43 = vsel %vm238_vm8, %v236_v35, %v1153_v29  ;;  %v240_v44 = vsel %vm238_vm8, %v237_v36, %v1154_v28  ;;  %v1183_v35 = vld [vmem:[#allocation9 + $0xb8] sm:$0xff]   ;;  %v1184_v36 = vld [vmem:[#allocation9 + $0xc0] sm:$0xff]  }
  0xc7   :  { %v1157_v37 = vpop.permute.xlu1 %1156 }
  0xc8   :  { %v1159_v38 = vunpack.i.h.bf16 %v1157_v37  ;;  %v1158_v39 = vunpack.i.l.bf16 %v1157_v37  ;;  %v244_v40 = vsel %vm110_vm1, %v153_v31, %v1148_v34  ;;  %v245_v41 = vsel %vm110_vm1, %v155_v32, %v1149_v33  ;;  %v1182_v34 = vld [vmem:[#allocation9 + $0xb0] sm:$0xff]   ;;  %v1185_v37 = vld [vmem:[#allocation9 + $0xc8] sm:$0xff]  }
  0xc9   :  { %v247_v42 = vpack.c.bf16 %v245_v41, %v244_v40  ;;  %v1188_v40 = vld [vmem:[#allocation9 + $0xe0] sm:$0xff]   ;;  %v1189_v41 = vld [vmem:[#allocation9 + $0xe8] sm:$0xff]  }
  0xca   :  { %v242_v45 = vsel %vm241_vm9, %v239_v43, %v1158_v39  ;;  %v243_v46 = vsel %vm241_vm9, %v240_v44, %v1159_v38  ;;  %v1186_v38 = vld [vmem:[#allocation9 + $0xd0] sm:$0xff]   ;;  %v1187_v39 = vld [vmem:[#allocation9 + $0xd8] sm:$0xff]   ;;  %v1192_v44 = vld [vmem:[#allocation9 + $0x100] sm:$0xff]  }
  0xcb   :  { %1041 = vmatprep.mubr.msk.bf16.mxu0 %vm226_vm4, %v247_v42  ;;  %v246_v47 = vpack.c.bf16 %v243_v46, %v242_v45  ;;  %v1190_v42 = vld [vmem:[#allocation9 + $0xf0] sm:$0xff]   ;;  %v1191_v43 = vld [vmem:[#allocation9 + $0xf8] sm:$0xff]  }
  0xcc   :  { %v451_v45 = vld [vmem:[#allocation11 + $0x20] sm:$0xff] }
  0xcd   :  { %368 = vmatmul.mubr.bf16.vlgmr.msra.gmra.mrb[0].mxu0 %v246_v47 }
  0xce   :  { %716 = vmatpush1.bf16.msra.mxu0 %v1182_v34 }
  0xcf   :  { %717 = vmatprep.subr.bf16.mxu0 %v1311_v0 }
  0xd2   :  { %718 = vmatpush1.bf16.msra.mxu0 %v1183_v35 }
  0xd3   :  { %719 = vmatprep.subr.bf16.mxu0 %v1311_v0 }
  0xd6   :  { %720 = vmatpush1.bf16.msra.mxu0 %v1184_v36 }
  0xd7   :  { %721 = vmatprep.subr.bf16.mxu0 %v1311_v0 }
  0xda   :  { %722 = vmatpush1.bf16.msra.mxu0 %v1185_v37 }
  0xdb   :  { %723 = vmatprep.subr.bf16.mxu0 %v1311_v0 }
  0xde   :  { %724 = vmatpush1.bf16.msra.mxu0 %v1186_v38 }
  0xdf   :  { %725 = vmatprep.subr.bf16.mxu0 %v1311_v0 }
  0xe2   :  { %726 = vmatpush1.bf16.msra.mxu0 %v1187_v39 }
  0xe3   :  { %727 = vmatprep.subr.bf16.mxu0 %v1311_v0 }
  0xe6   :  { %728 = vmatpush1.bf16.msra.mxu0 %v1188_v40 }
  0xe7   :  { %729 = vmatprep.subr.bf16.mxu0 %v1311_v0 }
  0xea   :  { %730 = vmatpush1.bf16.msra.mxu0 %v1189_v41 }
  0xeb   :  { %731 = vmatprep.subr.bf16.mxu0 %v1311_v0 }
  0xee   :  { %732 = vmatpush1.bf16.msra.mxu0 %v1190_v42  ;;  %v1206_v42 = vld [vmem:[#allocation9 + $0x170] sm:$0xff]  }
  0xef   :  { %733 = vmatprep.subr.bf16.mxu0 %v1311_v0 }
  0xf2   :  { %734 = vmatpush1.bf16.msra.mxu0 %v1191_v43  ;;  %v1318_v43 = vmov 0.0  }
  0xf3   :  { %735 = vmatprep.subr.bf16.mxu0 %v1311_v0 }
  0xf6   :  { %736 = vmatpush1.bf16.msra.mxu0 %v1192_v44  ;;  %v1207_v44 = vld [vmem:[#allocation9 + $0x178] sm:$0xff]  }
  0xf7   :  { %737 = vmatprep.subr.bf16.mxu0 %v1311_v0 }
 0x1a0   :  { %v369_v60 = vpop.f32.mrb[0].mxu0 }
 0x1a1   :  { %v370_v62 = vadd.f32 %v369_v60, %v268_v59  ;;  %v371_v63 = vpop.f32.mrb[1].mxu0  ;;  %v1193_v60 = vld [vmem:[#allocation9 + $0x108] sm:$0xff]  }
 0x1a2   :  { %v372_v2 = vpop.f32.mrb[2].mxu0  ;;  %738 = vmatpush1.bf16.msra.mxu0 %v1193_v60 }
 0x1a3   :  { %v376_v3 = vmax.f32 %v370_v62, 0.0  ;;  %v373_v4 = vadd.f32 %v372_v2, %v269_v61  ;;  %v374_v5 = vpop.f32.mrb[3].mxu0  ;;  %1091 = vmatprep.subr.bf16.mxu0 %v1318_v43 }
 0x1a5   :  { %v378_v7 = vadd.f32 %v376_v3, %v270_v1  ;;  %v377_v8 = vmax.f32 %v373_v4, 0.0 }
 0x1a7   :  { %v381_v9 = vrot.slane %v378_v7, 7  ;;  %v379_v10 = vadd.f32 %v377_v8, %v271_v6 }
 0x1a9   :  { %v387_v11 = vsel %vm386_vm10, 0.0, %v381_v9  ;;  %v388_v12 = vsel %vm386_vm10, %v381_v9, 0.0  ;;  %v384_v13 = vrot.slane %v379_v10, 5 }
 0x1aa   :  { %v389_v14 = vsel %vm67_vm0, %v388_v12, 0.0  ;;  %393 = vst.msk [vmem:[#allocation3] sm:$0xff] %vm232_vm6, %v387_v11 }
 0x1ab   :  { %v391_v16 = vsel %vm390_vm11, %v389_v14, %v384_v13  ;;  %v392_v17 = vsel %vm390_vm11, %v384_v13, 0.0 }
 0x1ac   :  { %394 = vst.msk [vmem:[#allocation3 + $0x8] sm:$0xff] %vm232_vm6, %v391_v16  ;;  %v1195_v16 = vld [vmem:[#allocation9 + $0x118] sm:$0xff]  }
 0x1ad   :  { %396 = vst.msk [vmem:[#allocation3 + $0x10] sm:$0xf] %vm395_vm12, %v392_v17  ;;  %v1196_v17 = vld [vmem:[#allocation9 + $0x120] sm:$0xff]  }
 0x1b1   :  { %v405_v21 = vld [vmem:[#allocation3 + $0x1] ss:$2 sm:$0xf]  ;;  %v397_v29 = vld [vmem:[#allocation3] ss:$2 sm:$0xf] }
 0x1b3   :  { %v413_v24 = vld [vmem:[#allocation3 + $0x2] ss:$2 sm:$0xf] }
 0x1b4   :  { %v407_v18 = vld [vmem:[#allocation3 + $0xb] ss:$2 sm:$0xf]  ;;  %v415_v20 = vld [vmem:[#allocation3 + $0xc] ss:$2 sm:$0xf] }
 0x1b5   :  { %v409_v19 = vrot.slane %v407_v18, 4  ;;  %v417_v22 = vrot.slane %v415_v20, 4  ;;  %v399_v27 = vld [vmem:[#allocation3 + $0xa] ss:$2 sm:$0xf]  ;;  %v1197_v18 = vld [vmem:[#allocation9 + $0x128] sm:$0xff]  }
 0x1b6   :  { %v401_v28 = vrot.slane %v399_v27, 4  ;;  %v1199_v20 = vld [vmem:[#allocation9 + $0x138] sm:$0xff]  }
 0x1b7   :  { %v411_v23 = vsel %vm101_vm3, %v405_v21, %v409_v19  ;;  %v419_v25 = vsel %vm101_vm3, %v413_v24, %v417_v22  ;;  %v1198_v19 = vld [vmem:[#allocation9 + $0x130] sm:$0xff]   ;;  %v1200_v21 = vld [vmem:[#allocation9 + $0x140] sm:$0xff]   ;;  %v1201_v22 = vld [vmem:[#allocation9 + $0x148] sm:$0xff]  }
 0x1b8   :  { %421 = vrot.lane.b32.xlu0 %v411_v23, %s1305_s22  ;;  %v426_v26 = vpack.c.bf16 %v419_v25, %v419_v25  ;;  %v403_v31 = vsel %vm101_vm3, %v397_v29, %v401_v28  ;;  %v1202_v23 = vld [vmem:[#allocation9 + $0x150] sm:$0xff]   ;;  %v1203_v24 = vld [vmem:[#allocation9 + $0x158] sm:$0xff]   ;;  %v1204_v25 = vld [vmem:[#allocation9 + $0x160] sm:$0xff]  }
 0x1ba   :  { %1054 = vmatprep.mubr.msk.bf16.mxu1 %vm232_vm6, %v426_v26  ;;  %v638_v26 = vld [vmem:[#allocation11 + $0x30] sm:$0xf] }
 0x22a   :  { %v422_v30 = vpop.permute.xlu0 %421 }
 0x22b   :  { %v424_v32 = vsel %vm232_vm6, %v403_v31, %v422_v30  ;;  %v639_v30 = vld [vmem:[#allocation11 + $0x38] sm:$0xf] }
 0x22c   :  { %v425_v33 = vpack.c.bf16 %v424_v32, %v424_v32 }
 0x22e   :  { %561 = vmatmul.mubr.bf16.vlgmr.msra.gmra.mrb[0].mxu1 %v425_v33 }
 0x22f   :  { %895 = vmatpush1.bf16.msra.mxu1 %v1194_v15 }
 0x230   :  { %896 = vmatprep.subr.bf16.mxu1 %v1311_v0 }
 0x233   :  { %897 = vmatpush1.bf16.msra.mxu1 %v1195_v16 }
 0x234   :  { %898 = vmatprep.subr.bf16.mxu1 %v1311_v0 }
 0x237   :  { %899 = vmatpush1.bf16.msra.mxu1 %v1196_v17 }
 0x238   :  { %900 = vmatprep.subr.bf16.mxu1 %v1311_v0 }
 0x23b   :  { %901 = vmatpush1.bf16.msra.mxu1 %v1197_v18 }
 0x23c   :  { %902 = vmatprep.subr.bf16.mxu1 %v1311_v0 }
 0x23f   :  { %903 = vmatpush1.bf16.msra.mxu1 %v1198_v19 }
 0x240   :  { %904 = vmatprep.subr.bf16.mxu1 %v1311_v0 }
 0x243   :  { %905 = vmatpush1.bf16.msra.mxu1 %v1199_v20 }
 0x244   :  { %906 = vmatprep.subr.bf16.mxu1 %v1311_v0 }
 0x247   :  { %907 = vmatpush1.bf16.msra.mxu1 %v1200_v21 }
 0x248   :  { %908 = vmatprep.subr.bf16.mxu1 %v1311_v0 }
 0x24b   :  { %909 = vmatpush1.bf16.msra.mxu1 %v1201_v22 }
 0x24c   :  { %910 = vmatprep.subr.bf16.mxu1 %v1311_v0 }
 0x24f   :  { %911 = vmatpush1.bf16.msra.mxu1 %v1202_v23 }
 0x250   :  { %912 = vmatprep.subr.bf16.mxu1 %v1311_v0 }
 0x253   :  { %913 = vmatpush1.bf16.msra.mxu1 %v1203_v24 }
 0x254   :  { %914 = vmatprep.subr.bf16.mxu1 %v1311_v0 }
 0x257   :  { %915 = vmatpush1.bf16.msra.mxu1 %v1204_v25 }
 0x258   :  { %916 = vmatprep.subr.bf16.mxu1 %v1311_v0  ;;  %v1205_v0 = vld [vmem:[#allocation9 + $0x168] sm:$0xff]  }
 0x25b   :  { %917 = vmatpush1.bf16.msra.mxu1 %v1205_v0 }
 0x301   :  { %v562_v46 = vpop.f32.mrb[0].mxu1 }
 0x302   :  { %v563_v47 = vadd.f32 %v562_v46, %v451_v45  ;;  %v564_v48 = vpop.f32.mrb[1].mxu1 }
 0x303   :  { %v565_v50 = vpop.f32.mrb[2].mxu1 }
 0x304   :  { %v568_v51 = vmax.f32 %v563_v47, 0.0  ;;  %v566_v52 = vpop.f32.mrb[3].mxu1 }
 0x306   :  { %v569_v53 = vadd.f32 %v568_v51, %v452_v49 }
 0x308   :  { %v571_v54 = vrot.slane %v569_v53, 7  ;;  %v573_v55 = vrot.slane %v569_v53, 5 }
 0x30a   :  { %v575_v56 = vsel %vm386_vm10, 0.0, %v571_v54  ;;  %v581_v57 = vsel %vm390_vm11, %v573_v55, 0.0 }
 0x30b   :  { %v577_v58 = vsel %vm576_vm13, %v575_v56, 0.0  ;;  %583 = vst.msk [vmem:[#allocation4 + $0x8] sm:$0xf] %vm395_vm12, %v581_v57 }
 0x30c   :  { %v578_v59 = vsel %vm76_vm2, %v577_v58, 0.0 }
 0x30d   :  { %v580_v61 = vsel %vm579_vm14, %v578_v59, %v573_v55 }
 0x30e   :  { %582 = vst.msk [vmem:[#allocation4] sm:$0xff] %vm232_vm6, %v580_v61  ;;  %v1208_v61 = vld [vmem:[#allocation9 + $0x180] sm:$0xff]  }
 0x312   :  { %v602_v62 = vld [vmem:[#allocation4 + $0x8] ss:$2 sm:$0x3] }
 0x313   :  { %v604_v63 = vrot.slane %v602_v62, 6  ;;  %v1209_v62 = vld [vmem:[#allocation9 + $0x188] sm:$0xff]  }
 0x315   :  { %v600_v1 = vld [vmem:[#allocation4 + $0x2] ss:$2 sm:$0x3]  ;;  %v594_v3 = vld [vmem:[#allocation4 + $0x7] ss:$2 sm:$0x3] }
 0x316   :  { %v606_v2 = vsel %vm67_vm0, %v600_v1, %v604_v63  ;;  %v596_v5 = vrot.slane %v594_v3, 6  ;;  %v592_v6 = vld [vmem:[#allocation4 + $0x1] ss:$2 sm:$0x3]  ;;  %v817_v63 = vld [vmem:[#allocation11 + $0x40] sm:$0x3] }
 0x317   :  { %v613_v4 = vpack.c.bf16 %v606_v2, %v606_v2  ;;  %v586_v8 = vld [vmem:[#allocation4 + $0x6] ss:$2 sm:$0x3]  ;;  %v584_v10 = vld [vmem:[#allocation4] ss:$2 sm:$0x3] }
 0x318   :  { %v598_v7 = vsel %vm67_vm0, %v592_v6, %v596_v5  ;;  %v588_v9 = vrot.slane %v586_v8, 6 }
 0x319   :  { %1067 = vmatprep.mubr.msk.bf16.mxu0 %vm232_vm6, %v613_v4  ;;  %608 = vrot.lane.b32.xlu1 %v598_v7, %s1305_s22  ;;  %v818_v4 = vld [vmem:[#allocation11 + $0x48] sm:$0x3] }
 0x31a   :  { %v590_v12 = vsel %vm67_vm0, %v584_v10, %v588_v9  ;;  %v945_v10 = vld [vmem:[#allocation11 + $0x50] sm:$0x3]  ;;  %vm1013_vm0 = vcmask 91136  }
 0x38b   :  { %v609_v11 = vpop.permute.xlu1 %608 }
 0x38c   :  { %v611_v13 = vsel %vm232_vm6, %v590_v12, %v609_v11 }
 0x38d   :  { %v612_v14 = vpack.c.bf16 %v611_v13, %v611_v13 }
 0x38f   :  { %748 = vmatmul.mubr.bf16.vlgmr.msra.gmra.mrb[4].mxu0 %v612_v14 }
 0x390   :  { %1092 = vmatpush3.bf16.msra.mxu0 %v1206_v42  ;;  %1099 = vmatprep.mubr.msk.bf16.mxu0 %vm1319_vm15, %v1318_v43 }
 0x391   :  { %1093 = vmatprep.subr.bf16.mxu0 %v1318_v43 }
 0x394   :  { %1094 = vmatpush3.bf16.msra.mxu0 %v1207_v44 }
 0x395   :  { %1095 = vmatprep.subr.bf16.mxu0 %v1318_v43 }
 0x398   :  { %1096 = vmatpush3.bf16.msra.mxu0 %v1208_v61 }
 0x399   :  { %1097 = vmatprep.subr.bf16.mxu0 %v1318_v43 }
 0x39c   :  { %1098 = vmatpush3.bf16.msra.mxu0 %v1209_v62 }
 0x462   :  { %v749_v27 = vpop.f32.mrb[4].mxu0 }
 0x463   :  { %v750_v28 = vadd.f32 %v749_v27, %v638_v26  ;;  %v751_v29 = vpop.f32.mrb[5].mxu0 }
 0x464   :  { %v752_v31 = vpop.f32.mrb[6].mxu0 }
 0x465   :  { %v755_v32 = vmax.f32 %v750_v28, 0.0  ;;  %v753_v33 = vpop.f32.mrb[7].mxu0 }
 0x467   :  { %v756_v34 = vadd.f32 %v755_v32, %v639_v30 }
 0x469   :  { %v758_v35 = vrot.slane %v756_v34, 7  ;;  %v760_v37 = vrot.slane %v756_v34, 5 }
 0x46b   :  { %v762_v36 = vsel %vm386_vm10, 0.0, %v758_v35 }
 0x46c   :  { %v763_v38 = vsel %vm390_vm11, %v762_v36, 0.0 }
 0x46d   :  { %v764_v39 = vsel %vm101_vm3, %v763_v38, 0.0 }
 0x46e   :  { %v765_v40 = vsel %vm576_vm13, %v764_v39, %v760_v37 }
 0x46f   :  { %v766_v41 = vsel %vm579_vm14, %v765_v40, 0.0 }
 0x470   :  { %767 = vst.msk [vmem:[#allocation5] sm:$0xff] %vm232_vm6, %v766_v41 }
 0x477   :  { %v775_v45 = vld [vmem:[#allocation5 + $0x5] sm:$0x1]  ;;  %v781_v47 = vld [vmem:[#allocation5 + $0x6] sm:$0x1]  ;;  %v774_v48 = vld [vmem:[#allocation5 + $0x1] sm:$0x1] }
 0x478   :  { %v777_v46 = vrot.slane %v775_v45, 7  ;;  %v783_v49 = vrot.slane %v781_v47, 7  ;;  %v780_v51 = vld [vmem:[#allocation5 + $0x2] sm:$0x1]  ;;  %v769_v54 = vld [vmem:[#allocation5 + $0x4] sm:$0x1] }
 0x479   :  { %v771_v55 = vrot.slane %v769_v54, 7  ;;  %v768_v56 = vld [vmem:[#allocation5] sm:$0x1] }
 0x47a   :  { %v779_v50 = vsel %vm386_vm10, %v774_v48, %v777_v46  ;;  %v785_v52 = vsel %vm386_vm10, %v780_v51, %v783_v49 }
 0x47b   :  { %787 = vrot.lane.b32.xlu0 %v779_v50, %s1305_s22  ;;  %v792_v53 = vpack.c.bf16 %v785_v52, %v785_v52  ;;  %v773_v58 = vsel %vm386_vm10, %v768_v56, %v771_v55  ;;  %s1320_s22 = smov [#allocation12]  }
 0x47c   :  { %s1021_s29 = sshll.u32 %s1320_s22, 4  ;;  %s1022_s29 = int_to_ptr.vmem [resolvable:$true] %s1021_s29 }
 0x47d   :  { %1080 = vmatprep.mubr.msk.bf16.mxu1 %vm232_vm6, %v792_v53  ;;  %s1276_s30 = scalar_lea.vmem %s1022_s29, 32  ;;  %p1281_p11 = scmp.lt.s32.totalorder %s1022_s29, %s1022_s29 }
 0x47e   :  { %p1277_p10 = scmp.ne.s32.totalorder %s1022_s29, %s1276_s30  ;;  %p1282_p12 = scmp.lt.s32.totalorder %s1276_s30, %s1276_s30 }
 0x480   :  { %p1283_p13 = por %p1282_p12, %p1281_p11 }
 0x482   :  { %p1284_p0 = pnand %p1283_p13, %p1277_p10 }
 0x4ed   :  { %v788_v57 = vpop.permute.xlu0 %787 }
 0x4ee   :  { %v790_v59 = vsel %vm232_vm6, %v773_v58, %v788_v57 }
 0x4ef   :  { %v791_v60 = vpack.c.bf16 %v790_v59, %v790_v59 }
 0x4f1   :  { %927 = vmatmul.mubr.bf16.vlgmr.msra.gmra.mrb[4].mxu1 %v791_v60 }
 0x5c4   :  { %v928_v1 = vpop.f32.mrb[4].mxu1 }
 0x5c5   :  { %v929_v2 = vadd.f32 %v928_v1, %v817_v63  ;;  %v930_v3 = vpop.f32.mrb[5].mxu1 }
 0x5c6   :  { %v931_v5 = vpop.f32.mrb[6].mxu1 }
 0x5c7   :  { %v934_v6 = vmax.f32 %v929_v2, 0.0  ;;  %v932_v7 = vpop.f32.mrb[7].mxu1 }
 0x5c9   :  { %v935_v8 = vadd.f32 %v934_v6, %v818_v4 }
 0x5cb   :  { %v936_v9 = vpack.c.bf16 %v935_v8, %v935_v8 }
 0x5cd   :  { %1100 = vmatmul.mubr.msk.bf16.vlgmr.msra.gmra.mrb[8].mxu0 %vm232_vm6, %v936_v9 }
 0x6a0   :  { %v1007_v11 = vpop.f32.mrb[8].mxu0 }
 0x6a1   :  { %v1008_v12 = vadd.f32 %v1007_v11, %v945_v10  ;;  %v1101_v13 = vpop.f32.mrb[9].mxu0 }
 0x6a2   :  { %v1010_v14 = vpop.f32.mrb[10].mxu0 }
 0x6a3   :  { %v1102_v15 = vpop.f32.mrb[11].mxu0  ;;  %1014 = vst.msk [vmem:[#allocation12] sm:$0x3] %vm1013_vm0, %v1008_v12 }
 0x6a4   :  { %1287 = shalt.err (!%p1284_p0)
}
 0x6a5   :  { %s1288_s6 = scalar_lea.hbm %s1516_s3, 32 }
 0x6a6   :  { %p1289_p1 = scmp.ne.s32.totalorder %s1516_s3, %s1288_s6  ;;  %p1292_p2 = scmp.lt.u32.totalorder %s1288_s6, %s1516_s3 }
 0x6a8   :  { %p1294_p3 = pnand %p1292_p2, %p1289_p1 }
 0x6aa   :  { %1297 = shalt.err (!%p1294_p3)
}
 0x6ab   :  { %1024 = dma.vmem_to_hbm [thread:$0]  %s1022_s29, 32, %s1516_s3, [#allocation8]  }
 0x6ac   :  { %1302 = dma.done.wait [#allocation8], 32  }
 0x6ad   :  { %1303 = vsyncadd [#allocation8], 4294967264 }
 0x6ae   :  { %1028 = vsyncpa [#allocation7], 1 }
 0x6af   :  { %1029 = vsyncpa [#allocation10], 1 }
 0x6b0   :  { %1030 = vsyncpa [#allocation8], 1 }

</bundles_post_ra>
